<compile_context>
chip_gen: v6e
topology: v6e:2x2x1
jax: 0.10.0
libtpu: 0.0.40
codegen_flags: <defaults>
</compile_context>

<pallas_src>
import math

import jax
import jax.numpy as jnp
import numpy as np
from jax.experimental import pallas as pl
from jax.experimental.pallas import tpu as pltpu


# ----------------------------------------------------------------------------- helpers
def _nearest_src_index(out_size, in_size):
    # floor(dst * in / out) in exact integer math, clamped.  Matches PyTorch's
    # float-based nearest index for all practical sizes (rare boundary pixels
    # may differ for non-integer ratios because PyTorch computes in float).
    dst = np.arange(out_size, dtype=np.int64)
    return np.minimum((dst * in_size) // out_size, in_size - 1).astype(np.int32)


def _output_size(in_hw, size, scale_factor):
    if size is not None:
        if isinstance(size, (tuple, list)):
            return int(size[0]), int(size[1])
        return int(size), int(size)
    if scale_factor is None:
        raise ValueError("Either size or scale_factor must be given.")
    if isinstance(scale_factor, (tuple, list)):
        sh, sw = float(scale_factor[0]), float(scale_factor[1])
    else:
        sh = sw = float(scale_factor)
    return int(math.floor(in_hw[0] * sh)), int(math.floor(in_hw[1] * sw))


def _vmem_capacity_bytes():
    try:
        return int(pltpu.get_tpu_info().vmem_capacity_bytes)
    except Exception:
        return 64 * 1024 * 1024  # conservative: v7x per-core VMEM


def _round_down(x, m):
    return (x // m) * m


# ----------------------------------------------------------------------------- kernel
def _make_kernel(k_h, use_matmul):
    if use_matmul:
        def kernel(x_ref, s_ref, o_ref):
            # (R, W) @ (W, W_out) -> (R, W_out).  One-hot columns => an exact
            # gather for bf16; Mosaic's f32 dot keeps f32-level accuracy
            # (verified against the reference below).
            y = jnp.dot(
                x_ref[...], s_ref[...], preferred_element_type=jnp.float32
            ).astype(o_ref.dtype)
            if k_h > 1:
                # Integer H upscale: replicate the resized row k_h times along
                # the lane dim (output viewed as (rows, k_h*W_out)).
                y = jnp.concatenate([y] * k_h, axis=-1)
            o_ref[...] = y
    else:
        def kernel(x_ref, o_ref):
            y = x_ref[...].astype(o_ref.dtype)
            if k_h > 1:
                y = jnp.concatenate([y] * k_h, axis=-1)
            o_ref[...] = y
    return kernel


# ----------------------------------------------------------------------------- wrapper
def interpolate_nearest(x, size=None, scale_factor=None):
    """Pallas TPU equivalent of F.interpolate(x, size, scale_factor, mode='nearest')."""
    N, C, H, W = x.shape
    H_out, W_out = _output_size((H, W), size, scale_factor)
    orig_dtype = x.dtype
    NC = N * C

    if H_out == H and W_out == W:
        return x  # nearest resize to the same size is the identity

    use_matmul = W_out != W

    # ---- H handling ---------------------------------------------------------
    if H_out % H == 0:
        k_h = H_out // H                  # integer upscale (incl. k_h == 1)
        x_rows = x.reshape(NC * H, W)     # free reshape, no extra HBM pass
    else:
        # General ratio: gather the source rows once in the wrapper.
        # TODO(synk): fuse this via a scalar-prefetched index_map row gather.
        idx_h = _nearest_src_index(H_out, H)
        x_rows = x.reshape(NC, H, W)[:, idx_h, :].reshape(NC * H_out, W)
        k_h = 1
        if not use_matmul:                # only H changed; gather already done
            return x_rows.reshape(N, C, H_out, W_out)

    rows_total = int(x_rows.shape[0])
    out_cols = k_h * W_out

    # ---- VMEM budget (generation-aware) --------------------------------------
    capacity = _vmem_capacity_bytes()
    usable = int(min(0.65 * capacity, capacity - 24 * 1024 * 1024))
    usable = max(usable, 8 * 1024 * 1024)

    sel_dtype = jnp.bfloat16 if x_rows.dtype == jnp.bfloat16 else jnp.float32
    sel_item = jnp.dtype(sel_dtype).itemsize

    if use_matmul and W * W_out * sel_item > usable // 3:
        # Very large W*W_out: the (W, W_out) selector would crowd VMEM.
        # TODO(synk): tile the W selector over a second grid axis; use the XLA
        # gather path for this rare regime for now.
        idx_w = _nearest_src_index(W_out, W)
        g = x_rows[:, idx_w]
        if k_h > 1:
            g = jnp.broadcast_to(g[:, None, :], (rows_total, k_h, W_out))
        return g.reshape(N, C, H_out, W_out)

    # ---- dtypes --------------------------------------------------------------
    if use_matmul and x_rows.dtype not in (jnp.float32, jnp.bfloat16):
        # TODO(synk): exact non-matmul W-gather path for int / fp8 / f16 inputs.
        x_rows = x_rows.astype(jnp.float32)
    in_item = jnp.dtype(x_rows.dtype).itemsize
    out_item = jnp.dtype(orig_dtype).itemsize
    sel_bytes = 2 * W * W_out * sel_item if use_matmul else 0  # double-buffered

    # ---- block-row sizing ----------------------------------------------------
    sublane = max(8, 32 // min(in_item, out_item))  # 8 f32, 16 bf16, 32 int8
    bytes_per_row = 2 * (W * in_item + out_cols * out_item)  # in+out, 2 buffers
    r_fit = max(1, (usable - sel_bytes) // bytes_per_row)

    if rows_total <= sublane:
        R = rows_total                                   # full dim: always legal
    else:
        R = min(r_fit, rows_total)
        if rows_total > 2 * sublane:
            R = min(R, pl.cdiv(rows_total, 2))           # >= 2 steps for megacore
        R = max(sublane, _round_down(R, sublane))

    grid = (pl.cdiv(rows_total, R),)

    # ---- operands / specs ----------------------------------------------------
    operands = [x_rows]
    in_specs = [pl.BlockSpec((R, W), lambda i: (i, 0))]
    if use_matmul:
        idx_w = _nearest_src_index(W_out, W)
        sel = np.zeros((W, W_out), dtype=np.float32)
        sel[idx_w, np.arange(W_out)] = 1.0               # exactly one 1.0 / column
        operands.append(jnp.asarray(sel, dtype=sel_dtype))
        in_specs.append(pl.BlockSpec((W, W_out), lambda i: (0, 0)))  # constant block
    out_specs = pl.BlockSpec((R, out_cols), lambda i: (i, 0))

    cost = pl.CostEstimate(
        flops=2 * rows_total * W * W_out if use_matmul else 0,
        transcendentals=0,
        bytes_accessed=int(
            rows_total * W * in_item + rows_total * out_cols * out_item + sel_bytes // 2
        ),
    )

    vmem_need = sel_bytes + R * bytes_per_row + 2 * 1024 * 1024
    cp_kwargs = dict(dimension_semantics=("parallel",))
    if vmem_need > 12 * 1024 * 1024:
        cp_kwargs["vmem_limit_bytes"] = int(
            min(vmem_need + 8 * 1024 * 1024, capacity - 16 * 1024 * 1024)
        )

    out2 = pl.pallas_call(
        _make_kernel(k_h, use_matmul),
        out_shape=jax.ShapeDtypeStruct((rows_total, out_cols), orig_dtype),
        grid_spec=pltpu.PrefetchScalarGridSpec(
            num_scalar_prefetch=0,
            grid=grid,
            in_specs=in_specs,
            out_specs=out_specs,
        ),
        compiler_params=pltpu.CompilerParams(**cp_kwargs),
        cost_estimate=cost,
    )(*operands)

    return out2.reshape(N, C, H_out, W_out)


class Interpolate:
    """Mirror of the PyTorch Interpolate module (mode='nearest' only)."""

    def __init__(self, size=None, scale_factor=None, mode="nearest", align_corners=None):
        if mode != "nearest":
            # TODO(synk): bilinear/bicubic are the same separable structure with
            # dense (not one-hot) weight matrices; not wired up.
            raise NotImplementedError("Only mode='nearest' is implemented in Pallas.")
        self.size = size
        self.scale_factor = scale_factor
        self.mode = mode
        self.align_corners = align_corners

    def __call__(self, x):
        return interpolate_nearest(x, size=self.size, scale_factor=self.scale_factor)


if __name__ == "__main__":
    key = jax.random.PRNGKey(0)
    x = jax.random.normal(key, (2, 4, 16, 16), dtype=jnp.float32)

    # Module with scale_factor=2, default mode='nearest' (integer H/W upscale path).
    interp = Interpolate(scale_factor=2, mode="nearest")
    y = jax.block_until_ready(interp(x))
    ref = jnp.repeat(jnp.repeat(x, 2, axis=2), 2, axis=3)
    assert y.shape == (2, 4, 32, 32)
    assert jnp.allclose(y, ref, atol=1e-6, rtol=1e-5), "mismatch vs nearest x2 reference"

    # Non-integer H ratio + arbitrary W via explicit size (wrapper row gather + W matmul).
    y2 = jax.block_until_ready(interpolate_nearest(x, size=(24, 40)))
    ih = (np.arange(24) * 16) // 24
    iw = (np.arange(40) * 16) // 40
    ref2 = x[:, :, ih, :][:, :, :, iw]
    assert y2.shape == (2, 4, 24, 40)
    assert jnp.allclose(y2, ref2, atol=1e-6, rtol=1e-5), "mismatch vs nearest resize reference"

    # bf16, non-square integer scales (exercises bf16 selector + k_h=3 lane concat).
    xb = jax.random.normal(jax.random.PRNGKey(1), (1, 3, 8, 32), dtype=jnp.bfloat16)
    y3 = jax.block_until_ready(interpolate_nearest(xb, scale_factor=(3, 2)))
    ref3 = jnp.repeat(jnp.repeat(xb, 3, axis=2), 2, axis=3)
    assert y3.shape == (1, 3, 24, 64)
    assert jnp.array_equal(y3, ref3), "bf16 nearest path should be exact"

    print("KERNEL_OK")
</pallas_src>

<mosaic_0001>
module attributes {stable_mosaic.version = 11 : i64} {
  func.func @kernel(%arg0: i32, %arg1: memref<64x16xf32, #tpu.memory_space<vmem>>, %arg2: memref<16x32xf32, #tpu.memory_space<vmem>>, %arg3: memref<64x64xf32, #tpu.memory_space<vmem>>) attributes {dimension_semantics = [#tpu.dimension_semantics<parallel>], iteration_bounds = array<i64: 2>, scalar_prefetch = 0 : i64, scratch_operands = 0 : i64, tpu.core_type = #tpu.core_type<tc>, window_params = [{transform_indices = @transform_0, window_bounds = array<i64: 64, 16>}, {pipeline_mode = #tpu.pipeline_mode<synchronous>, transform_indices = @transform_1, window_bounds = array<i64: 16, 32>}, {transform_indices = @transform_2, window_bounds = array<i64: 64, 64>}]} {
    %c0 = arith.constant 0 : index
    %c0_0 = arith.constant 0 : index
    %0 = vector.load %arg1[%c0, %c0_0] : memref<64x16xf32, #tpu.memory_space<vmem>>, vector<64x16xf32>
    %c0_1 = arith.constant 0 : index
    %c0_2 = arith.constant 0 : index
    %1 = vector.load %arg2[%c0_1, %c0_2] : memref<16x32xf32, #tpu.memory_space<vmem>>, vector<16x32xf32>
    %cst = arith.constant dense<0.000000e+00> : vector<64x32xf32>
    %2 = tpu.matmul %0, %1, %cst {dimension_numbers = #tpu.dot_dimension_numbers<[1], [0], [0], [1], [0, 0, 1, 1], [], []>} : vector<64x16xf32>, vector<16x32xf32>, vector<64x32xf32> -> vector<64x32xf32>
    %3 = tpu.concatenate %2, %2 in 1 : vector<64x32xf32>, vector<64x32xf32> -> vector<64x64xf32>
    %c0_3 = arith.constant 0 : index
    %c0_4 = arith.constant 0 : index
    %4 = vector.load %arg3[%c0_3, %c0_4] : memref<64x64xf32, #tpu.memory_space<vmem>>, vector<64x64xf32>
    tpu.vector_store %arg3[%c0_3, %c0_4], %3 {strides = array<i32>} : memref<64x64xf32, #tpu.memory_space<vmem>>, vector<64x64xf32>,
    return
  }
  func.func @transform_0(%arg0: i32) -> (i32, i32) {
    %c0_i32 = arith.constant 0 : i32
    %c0_i32_0 = arith.constant 0 : i32
    return %arg0, %c0_i32 : i32, i32
  }
  func.func @transform_1(%arg0: i32) -> (i32, i32) {
    %c0_i32 = arith.constant 0 : i32
    %c0_i32_0 = arith.constant 0 : i32
    %c0_i32_1 = arith.constant 0 : i32
    return %c0_i32, %c0_i32_0 : i32, i32
  }
  func.func @transform_2(%arg0: i32) -> (i32, i32) {
    %c0_i32 = arith.constant 0 : i32
    %c0_i32_0 = arith.constant 0 : i32
    return %arg0, %c0_i32 : i32, i32
  }
}

</mosaic_0001>

<bundles_post_ra>
// kernel: tpu_custom_call.1
= control target key start
LH: loop header
LB: loop body
LE: loop exit
PB: predicated region body
PF: predicated region fallthrough
CT: control target
= control target key end

     0   :  { %s475_s9 = smov 0   ;;  %s529_s0 = inlined_call_operand.vmem [shape: f32[128,16], index: 0, kind: input, shape index: {}]   ;;  %s530_s1 = inlined_call_operand.vmem [shape: f32[16,32], index: 1, kind: input, shape index: {}]   ;;  %s531_s2 = inlined_call_operand.vmem [shape: f32[128,64], index: 2, kind: output, shape index: {}]  }
   0x1 LB: > { %s393_s10 = sadd.s32 4294967295, %s457_s9   ;;  %p397_p0 = scmp.ge.s32.totalorder %s457_s9, 1  ;;  %s457_s9 = sphi %s475_s9, %s12_s9  }
   0x2   : > { %p113_p1 = scmp.lt.s32.totalorder %s457_s9, 3 }
   0x4   : > { %p114_p2 = pnand %p397_p0, %p113_p1 }
   0x5   : > { %s398_s15 = sshll.u32 (!%p114_p2), %s393_s10, 3  ;;  %s459_s20 = smov (!%p114_p2), 32  }
   0x6   : > { %117 = sbr.rel (%p114_p2) target bundleno = 339 (0x153), region = 28  ;;  %p136_p3 = scmp.lt.s32.totalorder (!%p114_p2), %s398_s15, 15 }
   0xb   : > { %v156_v0 = vld [vmem:[%s530_s1 + $0x8] sm:$0xff]  ;;  %v155_v1 = vld [vmem:[%s530_s1] sm:$0xff]  ;;  %s533_s15 = smov (!%p136_p3, %s398_s15), 15  ;;  %vm157_vm0 = vcmask 130048   ;;  %vm319_vm1 = vcmask 261120   ;;  %vm328_vm2 = vcmask 523264  }
   0xc   : > { %422 = vmatprep.subr.mxu0 %v156_v0  ;;  %438 = vmatprep.subr.mxu1 %v156_v0  ;;  %s399_s16 = sshll.u32 %s533_s15, 3 }
   0xd   : > { %423 = vmatpush3.msra.mxu0 %v156_v0  ;;  %440 = vmatpush3.msra.mxu1 %v156_v0  ;;  %s139_s19 = scalar_lea.vmem %s529_s0, %s399_s16  ;;  %s145_s23 = scalar_lea.vmem %s531_s2, %s399_s16 }
   0xe   : > { %424 = vmatprep.subr.mxu0 %v155_v1  ;;  %439 = vmatprep.subr.mxu1 %v155_v1  ;;  %v147_v2 = vld [vmem:[%s139_s19] sm:$0xff]  ;;  %v148_v4 = vld [vmem:[%s139_s19 + $0x8] sm:$0xff]  ;;  %v149_v6 = vld [vmem:[%s139_s19 + $0x10] sm:$0xff] }
   0xf   : > { %425 = vmatpush3.msra.mxu0 %v155_v1  ;;  %441 = vmatpush3.msra.mxu1 %v155_v1  ;;  %v151_v3 = vld [vmem:[%s139_s19 + $0x20] sm:$0xff]  ;;  %v152_v5 = vld [vmem:[%s139_s19 + $0x28] sm:$0xff]  ;;  %v153_v7 = vld [vmem:[%s139_s19 + $0x30] sm:$0xff] }
  0x10   : > { %426 = vmatprep.mubr.msk.f32.mxu0 %vm157_vm0, %v147_v2  ;;  %432 = vmatprep.mubr.msk.f32.mxu1 %vm157_vm0, %v151_v3  ;;  %v150_v8 = vld [vmem:[%s139_s19 + $0x18] sm:$0xff] }
  0x11   : > { %427 = vmatmul.mubr.msk.f32.vlgmr.msra.gmra.mxu0 %vm157_vm0, %v148_v4  ;;  %433 = vmatmul.mubr.msk.f32.vlgmr.msra.gmra.mxu1 %vm157_vm0, %v152_v5  ;;  %v154_v9 = vld [vmem:[%s139_s19 + $0x38] sm:$0xff] }
  0x12   : > { %429 = vmatprep.mubr.msk.f32.mxu0 %vm157_vm0, %v149_v6  ;;  %435 = vmatprep.mubr.msk.f32.mxu1 %vm157_vm0, %v153_v7 }
  0x15   : > { %430 = vmatmul.mubr.msk.f32.gmra.mxu0 %vm157_vm0, %v150_v8  ;;  %436 = vmatmul.mubr.msk.f32.gmra.mxu1 %vm157_vm0, %v154_v9 }
  0xd1   : > { %v428_v10 = vpop.f32.mrf.mxu0  ;;  %v434_v11 = vpop.f32.mrf.mxu1 }
  0xd2   : > { %305 = vrot.lane.b32.xlu1 %v434_v11, %s459_s20  ;;  %297 = vrot.lane.b32.xlu0 %v428_v10, %s459_s20 }
  0xd3   : > { %v248_v12 = vpop.f32.mrf.mxu0  ;;  %v268_v14 = vpop.f32.mrf.mxu1 }
  0xd5   : > { %v431_v13 = vpop.f32.mrf.mxu0  ;;  %v437_v16 = vpop.f32.mrf.mxu1 }
  0xd6   : > { %295 = vrot.lane.b32.xlu0 %v248_v12, %s459_s20  ;;  %301 = vrot.lane.b32.xlu1 %v431_v13, %s459_s20 }
  0xd7   : > { %v258_v15 = vpop.f32.mrf.mxu0  ;;  %v278_v17 = vpop.f32.mrf.mxu1 }
  0xda   : > { %303 = vrot.lane.b32.xlu0 %v268_v14, %s459_s20  ;;  %299 = vrot.lane.b32.xlu1 %v258_v15, %s459_s20 }
  0xde   : > { %307 = vrot.lane.b32.xlu0 %v278_v17, %s459_s20  ;;  %309 = vrot.lane.b32.xlu1 %v437_v16, %s459_s20 }
 0x144   : > { %v306_v18 = vpop.permute.xlu1 %305  ;;  %v298_v19 = vpop.permute.xlu0 %297 }
 0x145   : > { %v325_v20 = vsel %vm319_vm1, %v434_v11, %v306_v18  ;;  %v321_v21 = vsel %vm319_vm1, %v428_v10, %v298_v19 }
 0x146   : > { %334 = vst.msk [vmem:[%s145_s23 + $0x28] sm:$0xff] %vm328_vm2, %v325_v20  ;;  %330 = vst.msk [vmem:[%s145_s23 + $0x8] sm:$0xff] %vm328_vm2, %v321_v21 }
 0x148   : > { %v296_v22 = vpop.permute.xlu0 %295  ;;  %v302_v23 = vpop.permute.xlu1 %301 }
 0x149   : > { %v320_v24 = vsel %vm319_vm1, %v248_v12, %v296_v22  ;;  %v323_v25 = vsel %vm319_vm1, %v431_v13, %v302_v23 }
 0x14a   : > { %329 = vst.msk [vmem:[%s145_s23] sm:$0xff] %vm328_vm2, %v320_v24  ;;  %332 = vst.msk [vmem:[%s145_s23 + $0x18] sm:$0xff] %vm328_vm2, %v323_v25 }
 0x14c   : > { %v304_v26 = vpop.permute.xlu0 %303  ;;  %v300_v27 = vpop.permute.xlu1 %299 }
 0x14d   : > { %v324_v28 = vsel %vm319_vm1, %v268_v14, %v304_v26  ;;  %v322_v29 = vsel %vm319_vm1, %v258_v15, %v300_v27 }
 0x14e   : > { %333 = vst.msk [vmem:[%s145_s23 + $0x20] sm:$0xff] %vm328_vm2, %v324_v28  ;;  %331 = vst.msk [vmem:[%s145_s23 + $0x10] sm:$0xff] %vm328_vm2, %v322_v29 }
 0x150   : > { %v308_v30 = vpop.permute.xlu0 %307  ;;  %v310_v31 = vpop.permute.xlu1 %309 }
 0x151   : > { %v326_v32 = vsel %vm319_vm1, %v278_v17, %v308_v30  ;;  %v327_v33 = vsel %vm319_vm1, %v437_v16, %v310_v31 }
 0x152   : > { %335 = vst.msk [vmem:[%s145_s23 + $0x30] sm:$0xff] %vm328_vm2, %v326_v32  ;;  %336 = vst.msk [vmem:[%s145_s23 + $0x38] sm:$0xff] %vm328_vm2, %v327_v33 }
 0x153 PF: > { %s12_s9 = sadd.s32 1, %s457_s9  }
 0x154   : > { %p9_p4 = scmp.ge.s32.totalorder %s12_s9, 4  }
 0x156   :  { %11 = sbr.rel (!%p9_p4) target bundleno = 1 (0x1), region = 58 }

</bundles_post_ra>
